<compile_context>
chip_gen: v6e
topology: v6e:2x2x1
jax: 0.10.0
libtpu: 0.0.40
codegen_flags: <defaults>
</compile_context>

<pallas_src>
import functools
from math import sqrt

import jax
import jax.numpy as jnp
from jax import lax
from jax.experimental import pallas as pl
from jax.experimental.pallas import tpu as pltpu


def _attn_net_kernel(x_ref, w1_ref, b1_ref, w2t_ref, b2_ref, a_ref, *, mxu_dtype):
    # x_ref:   (TN, L)   w1_ref: (L, D)   b1_ref: (1, D)
    # w2t_ref: (C, D)    b2_ref: (1, C)   a_ref:  (TN, C)
    x = x_ref[...]
    if mxu_dtype is not None and x.dtype != mxu_dtype:
        # In-kernel cast: HBM traffic stays at the source dtype width while the
        # MXU runs at bf16 rate.  Accumulation below is forced to f32.
        x = x.astype(mxu_dtype)

    h = jnp.dot(x, w1_ref[...], preferred_element_type=jnp.float32)
    h = jnp.tanh(h + b1_ref[...].astype(jnp.float32))            # (TN, D) f32

    C = w2t_ref.shape[0]
    if C == 1:
        # VPU multiply + XLU lane reduction: avoids a 1-wide MXU pass.
        w2_row = w2t_ref[...].astype(jnp.float32)                 # (1, D)
        a = jnp.sum(h * w2_row, axis=-1, keepdims=True)           # (TN, 1)
    else:
        # General (small C) path: contract D, keep h in f32 (no downcast).
        a = lax.dot_general(
            h, w2t_ref[...].astype(jnp.float32),
            dimension_numbers=(((1,), (1,)), ((), ())),
            preferred_element_type=jnp.float32)                   # (TN, C)

    a_ref[...] = (a + b2_ref[...].astype(jnp.float32)).astype(a_ref.dtype)


@functools.partial(jax.jit, static_argnames=("block_n", "mxu_dtype"))
def attn_net_forward(x, w1, b1, w2, b2, *, block_n=1024, mxu_dtype=jnp.bfloat16):
    """Returns (A, x) with A of shape (N, n_classes), matching Attn_Net.forward.

    x : (N, L)  w1 : (L, D)  b1 : (1, D)  w2 : (D, C)  b2 : (1, C)
    block_n   : rows per tile (multiple of 128 recommended; raggedness is fine).
    mxu_dtype : dtype fed to the MXU for the first matmul (default bf16).  The
                cast happens inside the kernel; x is NOT copied/cast in HBM.
                Accumulation / bias / tanh / second layer stay in f32.
                Pass None to keep full f32 MXU inputs.
    """
    N, L = x.shape
    D = w1.shape[1]
    C = w2.shape[1]
    out_dtype = x.dtype

    # One-time tiny casts/transposes on the parameters only (never on x).
    w1_in = w1 if mxu_dtype is None else w1.astype(mxu_dtype)
    w2t = jnp.transpose(w2)  # (C, D): lane-dense for the VPU reduction path

    # Clamp the row tile so a tiny N doesn't request a huge (mostly OOB) block.
    bn = max(128, min(block_n, ((N + 127) // 128) * 128))
    grid = (pl.cdiv(N, bn),)

    x_bytes = jnp.dtype(x.dtype).itemsize
    w_bytes = jnp.dtype(w1_in.dtype).itemsize
    mxu_bytes = x_bytes if mxu_dtype is None else jnp.dtype(mxu_dtype).itemsize

    # VMEM budget: double-buffered x/out tiles + resident params (worst case
    # double-buffered) + in-kernel bf16 copy of the tile + f32 h/temporaries.
    bytes_needed = (
        2 * bn * L * x_bytes
        + 2 * bn * C * 4
        + 2 * (L * D * w_bytes + D * 4 + C * D * 4 + C * 4)
        + bn * L * mxu_bytes
        + 2 * bn * D * 4
    )
    # Cap at 48 MiB: plenty for block_n up to ~2048 at CLAM shapes, and leaves
    # headroom inside v7x's 64 MiB/TensorCore (v5e/v6e have 128 MiB physical).
    vmem_limit = int(min(48 * 1024 * 1024,
                         max(bytes_needed + (8 << 20), 32 * 1024 * 1024)))

    cost = pl.CostEstimate(
        flops=2 * N * L * D + 2 * N * D * C,
        transcendentals=N * D,
        bytes_accessed=(N * L * x_bytes + L * D * w_bytes
                        + (D + C * D + C) * 4 + N * C * 4),
    )

    a = pl.pallas_call(
        functools.partial(_attn_net_kernel, mxu_dtype=mxu_dtype),
        out_shape=jax.ShapeDtypeStruct((N, C), out_dtype),
        grid_spec=pltpu.PrefetchScalarGridSpec(
            num_scalar_prefetch=0,
            grid=grid,
            in_specs=[
                pl.BlockSpec((bn, L), lambda i: (i, 0)),   # x row tile (streamed)
                pl.BlockSpec((L, D), lambda i: (0, 0)),    # W1 (resident)
                pl.BlockSpec((1, D), lambda i: (0, 0)),    # b1
                pl.BlockSpec((C, D), lambda i: (0, 0)),    # W2^T (resident)
                pl.BlockSpec((1, C), lambda i: (0, 0)),    # b2
            ],
            out_specs=pl.BlockSpec((bn, C), lambda i: (i, 0)),
        ),
        compiler_params=pltpu.CompilerParams(
            dimension_semantics=("parallel",),
            vmem_limit_bytes=vmem_limit,
        ),
        cost_estimate=cost,
    )(x, w1_in, b1, w2t, b2)

    return a, x


def init_attn_net_params(key, L, D, n_classes, dtype=jnp.float32):
    """Deterministic PyTorch-Linear-style init (uniform(-1/sqrt(fan_in), +))."""
    k1, k2, k3, k4 = jax.random.split(key, 4)
    lim1 = 1.0 / sqrt(L)
    lim2 = 1.0 / sqrt(D)
    w1 = jax.random.uniform(k1, (L, D), dtype, minval=-lim1, maxval=lim1)
    b1 = jax.random.uniform(k2, (1, D), dtype, minval=-lim1, maxval=lim1)
    w2 = jax.random.uniform(k3, (D, n_classes), dtype, minval=-lim2, maxval=lim2)
    b2 = jax.random.uniform(k4, (1, n_classes), dtype, minval=-lim2, maxval=lim2)
    return w1, b1, w2, b2


if __name__ == "__main__":
    # Small, module-consistent shapes (real CLAM: L=1024, D=256, N in the
    # thousands).  N deliberately NOT a multiple of block_n to exercise the
    # pad-free ragged last block.
    # TODO(synk): nn.Dropout branch (dropout=True) not implemented; the default
    # module (dropout=False) and inference-time behavior are covered.
    N, L, D = 600, 256, 128
    block_n = 256

    key = jax.random.PRNGKey(0)
    kx, kp = jax.random.split(key)
    x = jax.random.normal(kx, (N, L), jnp.float32)

    hp = jax.lax.Precision.HIGHEST

    # --- n_classes = 1 (CLAM default), default in-kernel bf16 MXU inputs ---
    w1, b1, w2, b2 = init_attn_net_params(kp, L, D, 1)
    a, x_out = attn_net_forward(x, w1, b1, w2, b2, block_n=block_n)
    jax.block_until_ready((a, x_out))

    a_ref = jnp.dot(jnp.tanh(jnp.dot(x, w1, precision=hp) + b1), w2,
                    precision=hp) + b2
    assert a.shape == (N, 1)
    assert x_out.shape == (N, L)
    assert jnp.allclose(a, a_ref, atol=5e-2, rtol=5e-2)
    assert jnp.array_equal(x_out, x)

    # --- full f32 MXU path (tighter tolerance) ---
    a32, _ = attn_net_forward(x, w1, b1, w2, b2, block_n=block_n, mxu_dtype=None)
    jax.block_until_ready(a32)
    assert jnp.allclose(a32, a_ref, atol=2e-3, rtol=2e-3)

    # --- n_classes = 3 (general small-C MXU path for the second layer) ---
    w1c, b1c, w2c, b2c = init_attn_net_params(jax.random.PRNGKey(1), L, D, 3)
    a3, _ = attn_net_forward(x, w1c, b1c, w2c, b2c, block_n=block_n)
    jax.block_until_ready(a3)
    a3_ref = jnp.dot(jnp.tanh(jnp.dot(x, w1c, precision=hp) + b1c), w2c,
                     precision=hp) + b2c
    assert a3.shape == (N, 3)
    assert jnp.allclose(a3, a3_ref, atol=5e-2, rtol=5e-2)

    print("KERNEL_OK")
</pallas_src>

<mosaic_0001>
module attributes {stable_mosaic.version = 11 : i64} {
  func.func @_attn_net_kernel(%arg0: i32, %arg1: memref<256x256xf32, #tpu.memory_space<vmem>>, %arg2: memref<256x128xbf16, #tpu.memory_space<vmem>>, %arg3: memref<1x128xf32, #tpu.memory_space<vmem>>, %arg4: memref<1x128xf32, #tpu.memory_space<vmem>>, %arg5: memref<1x1xf32, #tpu.memory_space<vmem>>, %arg6: memref<256x1xf32, #tpu.memory_space<vmem>>) attributes {dimension_semantics = [#tpu.dimension_semantics<parallel>], iteration_bounds = array<i64: 3>, scalar_prefetch = 0 : i64, scratch_operands = 0 : i64, tpu.core_type = #tpu.core_type<tc>, window_params = [{transform_indices = @transform_0, window_bounds = array<i64: 256, 256>}, {pipeline_mode = #tpu.pipeline_mode<synchronous>, transform_indices = @transform_1, window_bounds = array<i64: 256, 128>}, {pipeline_mode = #tpu.pipeline_mode<synchronous>, transform_indices = @transform_2, window_bounds = array<i64: 1, 128>}, {pipeline_mode = #tpu.pipeline_mode<synchronous>, transform_indices = @transform_3, window_bounds = array<i64: 1, 128>}, {pipeline_mode = #tpu.pipeline_mode<synchronous>, transform_indices = @transform_4, window_bounds = array<i64: 1, 1>}, {transform_indices = @transform_5, window_bounds = array<i64: 256, 1>}]} {
    %c0 = arith.constant 0 : index
    %c0_0 = arith.constant 0 : index
    %0 = vector.load %arg1[%c0, %c0_0] : memref<256x256xf32, #tpu.memory_space<vmem>>, vector<256x256xf32>
    %1 = arith.truncf %0 : vector<256x256xf32> to vector<256x256xbf16>
    %c0_1 = arith.constant 0 : index
    %c0_2 = arith.constant 0 : index
    %2 = vector.load %arg2[%c0_1, %c0_2] : memref<256x128xbf16, #tpu.memory_space<vmem>>, vector<256x128xbf16>
    %cst = arith.constant dense<0.000000e+00> : vector<256x128xf32>
    %3 = tpu.matmul %1, %2, %cst {dimension_numbers = #tpu.dot_dimension_numbers<[1], [0], [0], [1], [0, 0, 1, 1], [], []>} : vector<256x256xbf16>, vector<256x128xbf16>, vector<256x128xf32> -> vector<256x128xf32>
    %c0_3 = arith.constant 0 : index
    %c0_4 = arith.constant 0 : index
    %4 = vector.load %arg3[%c0_3, %c0_4] : memref<1x128xf32, #tpu.memory_space<vmem>>, vector<1x128xf32>
    %5 = vector.broadcast %4 : vector<1x128xf32> to vector<256x128xf32>
    %6 = arith.addf %3, %5 : vector<256x128xf32>
    %7 = math.tanh %6 : vector<256x128xf32>
    %c0_5 = arith.constant 0 : index
    %c0_6 = arith.constant 0 : index
    %8 = vector.load %arg4[%c0_5, %c0_6] : memref<1x128xf32, #tpu.memory_space<vmem>>, vector<1x128xf32>
    %9 = vector.broadcast %8 : vector<1x128xf32> to vector<256x128xf32>
    %10 = arith.mulf %7, %9 : vector<256x128xf32>
    %cst_7 = arith.constant dense<0.000000e+00> : vector<256xf32>
    %11 = vector.multi_reduction <add>, %10, %cst_7 [1] : vector<256x128xf32> to vector<256xf32>
    %12 = vector.shape_cast %11 : vector<256xf32> to vector<256x1xf32>
    %c0_8 = arith.constant 0 : index
    %c0_9 = arith.constant 0 : index
    %13 = vector.load %arg5[%c0_8, %c0_9] : memref<1x1xf32, #tpu.memory_space<vmem>>, vector<1x1xf32>
    %14 = vector.broadcast %13 : vector<1x1xf32> to vector<256x1xf32>
    %15 = arith.addf %12, %14 : vector<256x1xf32>
    %c0_10 = arith.constant 0 : index
    %c0_11 = arith.constant 0 : index
    %16 = vector.load %arg6[%c0_10, %c0_11] : memref<256x1xf32, #tpu.memory_space<vmem>>, vector<256x1xf32>
    tpu.vector_store %arg6[%c0_10, %c0_11], %15 {strides = array<i32>} : memref<256x1xf32, #tpu.memory_space<vmem>>, vector<256x1xf32>,
    return
  }
  func.func @transform_0(%arg0: i32) -> (i32, i32) {
    %c0_i32 = arith.constant 0 : i32
    %c0_i32_0 = arith.constant 0 : i32
    return %arg0, %c0_i32 : i32, i32
  }
  func.func @transform_1(%arg0: i32) -> (i32, i32) {
    %c0_i32 = arith.constant 0 : i32
    %c0_i32_0 = arith.constant 0 : i32
    %c0_i32_1 = arith.constant 0 : i32
    return %c0_i32, %c0_i32_0 : i32, i32
  }
  func.func @transform_2(%arg0: i32) -> (i32, i32) {
    %c0_i32 = arith.constant 0 : i32
    %c0_i32_0 = arith.constant 0 : i32
    %c0_i32_1 = arith.constant 0 : i32
    return %c0_i32, %c0_i32_0 : i32, i32
  }
  func.func @transform_3(%arg0: i32) -> (i32, i32) {
    %c0_i32 = arith.constant 0 : i32
    %c0_i32_0 = arith.constant 0 : i32
    %c0_i32_1 = arith.constant 0 : i32
    return %c0_i32, %c0_i32_0 : i32, i32
  }
  func.func @transform_4(%arg0: i32) -> (i32, i32) {
    %c0_i32 = arith.constant 0 : i32
    %c0_i32_0 = arith.constant 0 : i32
    %c0_i32_1 = arith.constant 0 : i32
    return %c0_i32, %c0_i32_0 : i32, i32
  }
  func.func @transform_5(%arg0: i32) -> (i32, i32) {
    %c0_i32 = arith.constant 0 : i32
    %c0_i32_0 = arith.constant 0 : i32
    return %arg0, %c0_i32 : i32, i32
  }
}

</mosaic_0001>

<bundles_post_ra>
// kernel: attn_net_forward.1
= control target key start
LH: loop header
LB: loop body
LE: loop exit
PB: predicated region body
PF: predicated region fallthrough
CT: control target
= control target key end

     0   :  { %s2265_s0 = inlined_call_operand.hbm [shape: f32[600,256], index: 0, kind: input, shape index: {}]   ;;  %s2266_s1 = inlined_call_operand.vmem [shape: bf16[256,128], index: 1, kind: input, shape index: {}]   ;;  %s2267_s2 = inlined_call_operand.vmem [shape: f32[1,128], index: 2, kind: input, shape index: {}]   ;;  %s2268_s3 = inlined_call_operand.vmem [shape: f32[1,128], index: 3, kind: input, shape index: {}]   ;;  %s2269_s4 = inlined_call_operand.<no memory space> [shape: f32[1,1], index: 4, kind: input, shape index: {}]   ;;  %s2270_s5 = inlined_call_operand.vmem [shape: f32[600,1], index: 5, kind: output, shape index: {}]  }
   0x1   :  { %v10_v0 = vstv %s2269_s4 }
   0x2   :  { %11 = vst [vmem:[#allocation2] sm:$0x1] %v10_v0 }
   0x3   :  { %12 = vsyncpa [#allocation4], 0 }
   0x4   :  { %14 = vsyncpa [#allocation4 + $0x1], 0  ;;  %s1737_s20 = smov 0   ;;  %s1739_s21 = smov 0  }
   0x5   :  { %s1741_s22 = smov 0   ;;  %s1743_s23 = smov 0  }
   0x6 LB: > { %s1756_s4 = sadd.s32 4294967295, %s1667_s23   ;;  %s1759_s24 = sadd.s32 1, %s1667_s23   ;;  %s1667_s23 = sphi %s1743_s23, %s2281_s23   ;;  %s1663_s22 = sphi %s1741_s22, %s2280_s22   ;;  %s1659_s21 = sphi %s1739_s21, %s2279_s21   ;;  %s1655_s20 = sphi %s1737_s20, %s2278_s20  }
   0x7   : > { %s24_s25 = ssub.s32 %s1667_s23, %s1759_s24  ;;  %s27_s26 = sadd.s32 1, %s1663_s22 }
   0x8   : > { %p25_p0 = scmp.eq.s32.totalorder %s24_s25, 0  ;;  %p34_p1 = scmp.ne.s32.totalorder %s1663_s22, %s1659_s21 }
   0x9   : > { %p35_p2 = scmp.eq.s32.totalorder %s1667_s23, 0  ;;  %p40_p3 = scmp.ne.s32.totalorder %s1659_s21, %s1655_s20 }
   0xa   : > { %s1769_s27 = scalar_select %p25_p0, %s1663_s22, %s27_s26  }
   0xb   : > { %p36_p4 = por %p35_p2, %p34_p1  ;;  %p41_p5 = scmp.eq.s32.totalorder %s1756_s4, 0 }
   0xc   : > { %p148_p6 = scmp.eq.s32.totalorder %s1756_s4, 2  ;;  %p1213_p9 = scmp.ge.s32.totalorder %s1667_s23, 3 }
   0xd   : > { %p1773_p7 = por %p41_p5, %p40_p3 }
   0xe   : > { %p1777_p8 = por %p148_p6, %p34_p1  ;;  %182 = sbr.rel (%p1213_p9) target bundleno = 51 (0x33), region = 32 }
  0x13   : > { %185 = sbr.rel (!%p36_p4) target bundleno = 51 (0x33), region = 36  ;;  %s186_s30 = sand.u32 (%p36_p4), 1, %s1663_s22  }
  0x14   : > { %s1215_s6 = sshll.u32 (%p36_p4), %s1667_s23, 5  ;;  %s1214_s7 = sshll.u32 (%p36_p4), %s186_s30, 9 }
  0x15   : > { %s192_s8 = ssub.s32 (%p36_p4), 75, %s1215_s6  ;;  %s1787_s11 = scalar_lea.sflag (%p36_p4), [#allocation4], %s186_s30 }
  0x16   : > { %p193_p10 = scmp.lt.s32.totalorder (%p36_p4), %s192_s8, 32  ;;  %s190_s12 = scalar_lea.vmem (%p36_p4), [#allocation3], %s1214_s7 }
  0x18   : > { %s2283_s8 = smov (!%p193_p10, %s192_s8), 32 }
  0x19   : > { %s1784_s9 = sshll.u32 %s2283_s8, 8 }
  0x1a   : > { %s198_s10 = ssub.s32 8192, %s1784_s9 }
  0x1b   : > { %199 = vsyncadd %s1787_s11, %s198_s10  ;;  %p1218_p11 = scmp.ne.s32.totalorder %s1784_s9, 0  ;;  %s1264_s13 = sshll.u32 %s1667_s23, 13 }
  0x1c   : > { %s1795_s16 = scalar_lea.hbm %s2265_s0, %s1264_s13  ;;  %s205_s17 = sshll.u32 %s190_s12, 4  ;;  %s1797_s17 = int_to_ptr.vmem [resolvable:$true] %s205_s17 }
  0x1d   : > { %s1575_s18 = scalar_lea.hbm %s1795_s16, %s1784_s9  ;;  %s1579_s25 = scalar_lea.hbm %s2265_s0, 19200 }
  0x1e   : > { %p1576_p12 = scmp.ne.s32.totalorder %s1795_s16, %s1575_s18  ;;  %p1580_p1 = scmp.lt.s32.totalorder %s1795_s16, %s2265_s0 }
  0x1f   : > { %p1581_p2 = scmp.lt.s32.totalorder %s1579_s25, %s1575_s18 }
  0x20   : > { %p1577_p13 = pnand %p1576_p12, %p1218_p11 }
  0x21   : > { %p1582_p3 = por %p1581_p2, %p1580_p1 }
  0x22   : > { %p1578_p0 = pneg %p1577_p13 }
  0x24   : > { %p1583_p4 = pnand %p1582_p3, %p1578_p0 }
  0x26   : > { %1586 = shalt.err (!%p1583_p4)
}
  0x27   : > { %s1587_s6 = scalar_lea.vmem %s1797_s17, %s1784_s9  ;;  %s1701_s7 = smov [#allocation3]  }
  0x28   : > { %p1588_p5 = scmp.ne.s32.totalorder %s1797_s17, %s1587_s6  ;;  %s1591_s8 = sshll.u32 %s1701_s7, 4  ;;  %s1592_s8 = int_to_ptr.vmem [resolvable:$false] %s1591_s8 }
  0x29   : > { %s1593_s10 = scalar_lea.vmem %s1592_s8, 16384  ;;  %p1594_p10 = scmp.lt.s32.totalorder %s1797_s17, %s1592_s8 }
  0x2a   : > { %p1589_p6 = pnand %p1588_p5, %p1218_p11  ;;  %p1595_p12 = scmp.lt.s32.totalorder %s1593_s10, %s1587_s6 }
  0x2c   : > { %p1590_p9 = pneg %p1589_p6  ;;  %p1596_p13 = por %p1595_p12, %p1594_p10 }
  0x2e   : > { %p1597_p1 = pnand %p1596_p13, %p1590_p9 }
  0x30   : > { %1600 = shalt.err (!%p1597_p1)
}
  0x31   : > { %s1702_s12 = smov 256   ;;  %s1703_s13 = smov 16  }
  0x32   : > { %211 = dma.hbm_to_vmem [thread:$0]  (%p1218_p11), %s1795_s16, %s1784_s9, %s1797_s17, %s1787_s11, %s1702_s12, %s1702_s12, %s1703_s13  }
  0x33 PF: > { %p1223_p0 = scmp.ge.s32.totalorder %s1667_s23, 1  ;;  %p213_p2 = scmp.lt.s32.totalorder %s1667_s23, 4 }
  0x35   : > { %p214_p3 = pnand %p1223_p0, %p213_p2 }
  0x36   : > { %s1826_s14 = sand.u32 (!%p214_p3), 1, %s1659_s21  }
  0x37   : > { %217 = sbr.rel (%p214_p3) target bundleno = 562 (0x232), region = 40  ;;  %s1224_s15 = sshll.u32 (!%p214_p3), %s1826_s14, 9 }
  0x38   : > { %s220_s18 = scalar_lea.sflag (!%p214_p3), [#allocation4], %s1826_s14  ;;  %s1830_s19 = scalar_lea.vmem (!%p214_p3), [#allocation3], %s1224_s15 }
  0x3c   : > { %1650 = dma.done.wait (%p1773_p7), %s220_s18, 8192  }
  0x3d   : > { %1652 = vsyncadd (%p1773_p7), %s220_s18, 4294959104  ;;  %v1495_v1 = vld [vmem:[%s2266_s1 + $0x78] sm:$0xff]   ;;  %v1497_v3 = vld [vmem:[%s2266_s1 + $0x70] sm:$0xff]   ;;  %s1225_s18 = sshll.u32 %s1826_s14, 8  ;;  %vm827_vm0 = vcmask 7168   ;;  %s1246_s14 = sshll.u32 (%p1777_p8), %s1756_s4, 5 }
  0x3e   : > { %v1496_v2 = vld [vmem:[%s2266_s1 + $0x38] sm:$0xff]   ;;  %1268 = vmatprep.subr.bf16.mxu0 %v1495_v1  ;;  %1380 = vmatprep.subr.bf16.mxu1 %v1495_v1  ;;  %v1498_v4 = vld [vmem:[%s2266_s1 + $0x30] sm:$0xff]   ;;  %v1499_v5 = vld [vmem:[%s2266_s1 + $0x68] sm:$0xff]   ;;  %s2026_s9 = scalar_lea.vmem [#allocation5], %s1225_s18   ;;  %s1265_s11 = sshll.u32 (%p1777_p8), %s1756_s4, 8 }
  0x3f   : > { %1269 = vmatpush3.bf16.msra.mxu0 %v1496_v2  ;;  %1388 = vmatpush3.bf16.msra.mxu1 %v1496_v2  ;;  %v1500_v6 = vld [vmem:[%s2266_s1 + $0x28] sm:$0xff]   ;;  %v1501_v7 = vld [vmem:[%s2266_s1 + $0x60] sm:$0xff]   ;;  %v1503_v9 = vld [vmem:[%s2266_s1 + $0x58] sm:$0xff]   ;;  %s868_s23 = ssub.s32 (%p1777_p8), 75, %s1246_s14  ;;  %s2130_s20 = scalar_lea.vmem (%p1777_p8), %s2270_s5, %s1265_s11  }
  0x40   : > { %1270 = vmatprep.subr.bf16.mxu0 %v1497_v3  ;;  %1381 = vmatprep.subr.bf16.mxu1 %v1497_v3  ;;  %v1502_v8 = vld [vmem:[%s2266_s1 + $0x20] sm:$0xff]   ;;  %v1504_v10 = vld [vmem:[%s2266_s1 + $0x18] sm:$0xff]   ;;  %v1505_v11 = vld [vmem:[%s2266_s1 + $0x50] sm:$0xff]   ;;  %p869_p7 = scmp.lt.s32.totalorder (%p1777_p8), %s868_s23, 32 }
  0x41   : > { %v262_v12 = vld [vmem:[%s1830_s19 + $0x8] sm:$0xff]  ;;  %v264_v13 = vld [vmem:[%s1830_s19 + $0x18] sm:$0xff]  ;;  %v261_v23 = vld [vmem:[%s1830_s19] sm:$0xff] }
  0x42   : > { %v294_v14 = vld [vmem:[%s1830_s19 + $0x108] sm:$0xff]  ;;  %v326_v15 = vpack.c.bf16 %v264_v13, %v262_v12  ;;  %v296_v16 = vld [vmem:[%s1830_s19 + $0x118] sm:$0xff]  ;;  %v263_v24 = vld [vmem:[%s1830_s19 + $0x10] sm:$0xff] }
  0x43   : > { %1271 = vmatpush3.bf16.msra.mxu0 %v1498_v4  ;;  %1389 = vmatpush3.bf16.msra.mxu1 %v1498_v4  ;;  %v342_v17 = vpack.c.bf16 %v296_v16, %v294_v14  ;;  %v1506_v18 = vld [vmem:[%s2266_s1 + $0x10] sm:$0xff]   ;;  %v1507_v19 = vld [vmem:[%s2266_s1 + $0x48] sm:$0xff]   ;;  %v1509_v21 = vld [vmem:[%s2266_s1 + $0x40] sm:$0xff]   ;;  %v325_v31 = vpack.c.bf16 %v263_v24, %v261_v23 }
  0x44   : > { %1272 = vmatprep.subr.bf16.mxu0 %v1499_v5  ;;  %1382 = vmatprep.subr.bf16.mxu1 %v1499_v5  ;;  %v1508_v20 = vld [vmem:[%s2266_s1 + $0x8] sm:$0xff]   ;;  %v1510_v22 = vld [vmem:[%s2266_s1] sm:$0xff]   ;;  %v295_v26 = vld [vmem:[%s1830_s19 + $0x110] sm:$0xff] }
  0x45   : > { %524 = vmatprep.mubr.bf16.mxu0 %v326_v15  ;;  %588 = vmatprep.mubr.bf16.mxu1 %v342_v17  ;;  %v293_v25 = vld [vmem:[%s1830_s19 + $0x100] sm:$0xff]  ;;  %v266_v27 = vld [vmem:[%s1830_s19 + $0x28] sm:$0xff]  ;;  %v268_v28 = vld [vmem:[%s1830_s19 + $0x38] sm:$0xff] }
  0x46   : > { %v298_v29 = vld [vmem:[%s1830_s19 + $0x128] sm:$0xff]  ;;  %v300_v30 = vld [vmem:[%s1830_s19 + $0x138] sm:$0xff]  ;;  %v341_v32 = vpack.c.bf16 %v295_v26, %v293_v25  ;;  %v328_v33 = vpack.c.bf16 %v268_v28, %v266_v27  ;;  %v265_v35 = vld [vmem:[%s1830_s19 + $0x20] sm:$0xff] }
  0x47   : > { %1273 = vmatpush3.bf16.msra.mxu0 %v1500_v6  ;;  %1390 = vmatpush3.bf16.msra.mxu1 %v1500_v6  ;;  %v344_v34 = vpack.c.bf16 %v300_v30, %v298_v29  ;;  %v267_v36 = vld [vmem:[%s1830_s19 + $0x30] sm:$0xff]  ;;  %v297_v37 = vld [vmem:[%s1830_s19 + $0x120] sm:$0xff]  ;;  %v270_v39 = vld [vmem:[%s1830_s19 + $0x48] sm:$0xff] }
  0x48   : > { %1274 = vmatprep.subr.bf16.mxu0 %v1501_v7  ;;  %1383 = vmatprep.subr.bf16.mxu1 %v1501_v7  ;;  %v299_v38 = vld [vmem:[%s1830_s19 + $0x130] sm:$0xff]  ;;  %v272_v40 = vld [vmem:[%s1830_s19 + $0x58] sm:$0xff]  ;;  %v302_v41 = vld [vmem:[%s1830_s19 + $0x148] sm:$0xff]  ;;  %v327_v43 = vpack.c.bf16 %v267_v36, %v265_v35 }
  0x49   : > { %v304_v42 = vld [vmem:[%s1830_s19 + $0x158] sm:$0xff]  ;;  %v343_v44 = vpack.c.bf16 %v299_v38, %v297_v37  ;;  %v330_v45 = vpack.c.bf16 %v272_v40, %v270_v39  ;;  %v269_v47 = vld [vmem:[%s1830_s19 + $0x40] sm:$0xff]  ;;  %v271_v48 = vld [vmem:[%s1830_s19 + $0x50] sm:$0xff] }
  0x4a   : > { %v346_v46 = vpack.c.bf16 %v304_v42, %v302_v41  ;;  %v301_v49 = vld [vmem:[%s1830_s19 + $0x140] sm:$0xff]  ;;  %v303_v50 = vld [vmem:[%s1830_s19 + $0x150] sm:$0xff]  ;;  %v274_v51 = vld [vmem:[%s1830_s19 + $0x68] sm:$0xff]  ;;  %v329_v55 = vpack.c.bf16 %v271_v48, %v269_v47 }
  0x4b   : > { %1275 = vmatpush3.bf16.msra.mxu0 %v1502_v8  ;;  %1391 = vmatpush3.bf16.msra.mxu1 %v1502_v8  ;;  %v276_v52 = vld [vmem:[%s1830_s19 + $0x78] sm:$0xff]  ;;  %v306_v53 = vld [vmem:[%s1830_s19 + $0x168] sm:$0xff]  ;;  %v345_v56 = vpack.c.bf16 %v303_v50, %v301_v49  ;;  %v273_v59 = vld [vmem:[%s1830_s19 + $0x60] sm:$0xff] }
  0x4c   : > { %1276 = vmatprep.subr.bf16.mxu0 %v1503_v9  ;;  %1384 = vmatprep.subr.bf16.mxu1 %v1503_v9  ;;  %v308_v54 = vld [vmem:[%s1830_s19 + $0x178] sm:$0xff]  ;;  %v332_v57 = vpack.c.bf16 %v276_v52, %v274_v51  ;;  %v275_v60 = vld [vmem:[%s1830_s19 + $0x70] sm:$0xff]  ;;  %v305_v61 = vld [vmem:[%s1830_s19 + $0x160] sm:$0xff] }
  0x4d   : > { %v348_v58 = vpack.c.bf16 %v308_v54, %v306_v53  ;;  %v307_v62 = vld [vmem:[%s1830_s19 + $0x170] sm:$0xff]  ;;  %v278_v63 = vld [vmem:[%s1830_s19 + $0x88] sm:$0xff]  ;;  %v280_v0 = vld [vmem:[%s1830_s19 + $0x98] sm:$0xff]  ;;  %v331_v3 = vpack.c.bf16 %v275_v60, %v273_v59 }
  0x4e   : > { %v310_v1 = vld [vmem:[%s1830_s19 + $0x188] sm:$0xff]  ;;  %v312_v2 = vld [vmem:[%s1830_s19 + $0x198] sm:$0xff]  ;;  %v347_v4 = vpack.c.bf16 %v307_v62, %v305_v61  ;;  %v334_v5 = vpack.c.bf16 %v280_v0, %v278_v63  ;;  %v277_v7 = vld [vmem:[%s1830_s19 + $0x80] sm:$0xff] }
  0x4f   : > { %1277 = vmatpush3.bf16.msra.mxu0 %v1504_v10  ;;  %1392 = vmatpush3.bf16.msra.mxu1 %v1504_v10  ;;  %v350_v6 = vpack.c.bf16 %v312_v2, %v310_v1  ;;  %v279_v8 = vld [vmem:[%s1830_s19 + $0x90] sm:$0xff]  ;;  %v309_v9 = vld [vmem:[%s1830_s19 + $0x180] sm:$0xff]  ;;  %v284_v12 = vld [vmem:[%s1830_s19 + $0xb8] sm:$0xff] }
  0x50   : > { %1278 = vmatprep.subr.bf16.mxu0 %v1505_v11  ;;  %1385 = vmatprep.subr.bf16.mxu1 %v1505_v11  ;;  %v311_v10 = vld [vmem:[%s1830_s19 + $0x190] sm:$0xff]  ;;  %v282_v11 = vld [vmem:[%s1830_s19 + $0xa8] sm:$0xff]  ;;  %v316_v14 = vld [vmem:[%s1830_s19 + $0x1b8] sm:$0xff]  ;;  %v333_v15 = vpack.c.bf16 %v279_v8, %v277_v7 }
  0x51   : > { %v314_v13 = vld [vmem:[%s1830_s19 + $0x1a8] sm:$0xff]  ;;  %v349_v16 = vpack.c.bf16 %v311_v10, %v309_v9  ;;  %v336_v17 = vpack.c.bf16 %v284_v12, %v282_v11  ;;  %v288_v24 = vld [vmem:[%s1830_s19 + $0xd8] sm:$0xff] }
  0x52   : > { %v286_v23 = vld [vmem:[%s1830_s19 + $0xc8] sm:$0xff]  ;;  %v320_v26 = vld [vmem:[%s1830_s19 + $0x1d8] sm:$0xff] }
  0x53   : > { %1279 = vmatpush3.bf16.msra.mxu0 %v1506_v18  ;;  %1393 = vmatpush3.bf16.msra.mxu1 %v1506_v18  ;;  %v352_v18 = vpack.c.bf16 %v316_v14, %v314_v13  ;;  %v318_v25 = vld [vmem:[%s1830_s19 + $0x1c8] sm:$0xff]  ;;  %v338_v29 = vpack.c.bf16 %v288_v24, %v286_v23  ;;  %v292_v36 = vld [vmem:[%s1830_s19 + $0xf8] sm:$0xff] }
  0x54   : > { %1280 = vmatprep.subr.bf16.mxu0 %v1507_v19  ;;  %1386 = vmatprep.subr.bf16.mxu1 %v1507_v19  ;;  %v281_v19 = vld [vmem:[%s1830_s19 + $0xa0] sm:$0xff]  ;;  %v354_v30 = vpack.c.bf16 %v320_v26, %v318_v25  ;;  %v290_v35 = vld [vmem:[%s1830_s19 + $0xe8] sm:$0xff]  ;;  %v324_v38 = vld [vmem:[%s1830_s19 + $0x1f8] sm:$0xff] }
  0x55   : > { %v322_v37 = vld [vmem:[%s1830_s19 + $0x1e8] sm:$0xff]  ;;  %v340_v41 = vpack.c.bf16 %v292_v36, %v290_v35  ;;  %v1951_v51 = vld [vmem:[%s2267_s2] ss:$0 sm:$0xff] }
  0x56   : > { %v356_v42 = vpack.c.bf16 %v324_v38, %v322_v37 }
  0x57   : > { %1281 = vmatpush3.bf16.msra.mxu0 %v1508_v20  ;;  %1394 = vmatpush3.bf16.msra.mxu1 %v1508_v20  ;;  %v283_v20 = vld [vmem:[%s1830_s19 + $0xb0] sm:$0xff] }
  0x58   : > { %1282 = vmatprep.subr.bf16.mxu0 %v1509_v21  ;;  %1387 = vmatprep.subr.bf16.mxu1 %v1509_v21  ;;  %v313_v21 = vld [vmem:[%s1830_s19 + $0x1a0] sm:$0xff]  ;;  %v335_v27 = vpack.c.bf16 %v283_v20, %v281_v19 }
  0x5b   : > { %1283 = vmatpush3.bf16.msra.mxu0 %v1510_v22  ;;  %1395 = vmatpush3.bf16.msra.mxu1 %v1510_v22  ;;  %v315_v22 = vld [vmem:[%s1830_s19 + $0x1b0] sm:$0xff] }
  0x5c   : > { %v351_v28 = vpack.c.bf16 %v315_v22, %v313_v21  ;;  %v1964_v22 = vld [vmem:[%s2268_s3] ss:$0 sm:$0xff] }
  0x5e   : > { %525 = vmatmul.mubr.bf16.vlgmr.msra.gmra.mxu0 %v325_v31  ;;  %589 = vmatmul.mubr.bf16.vlgmr.msra.gmra.mxu1 %v341_v32  ;;  %v285_v31 = vld [vmem:[%s1830_s19 + $0xc0] sm:$0xff]  ;;  %v287_v32 = vld [vmem:[%s1830_s19 + $0xd0] sm:$0xff] }
  0x5f   : > { %532 = vmatprep.mubr.bf16.mxu0 %v328_v33  ;;  %596 = vmatprep.mubr.bf16.mxu1 %v344_v34  ;;  %v317_v33 = vld [vmem:[%s1830_s19 + $0x1c0] sm:$0xff]  ;;  %v319_v34 = vld [vmem:[%s1830_s19 + $0x1d0] sm:$0xff]  ;;  %v337_v39 = vpack.c.bf16 %v287_v32, %v285_v31 }
  0x60   : > { %v353_v40 = vpack.c.bf16 %v319_v34, %v317_v33 }
  0x66   : > { %533 = vmatmul.mubr.bf16.gmra.mxu0 %v327_v43  ;;  %597 = vmatmul.mubr.bf16.gmra.mxu1 %v343_v44  ;;  %v289_v43 = vld [vmem:[%s1830_s19 + $0xe0] sm:$0xff]  ;;  %v291_v44 = vld [vmem:[%s1830_s19 + $0xf0] sm:$0xff] }
  0x67   : > { %540 = vmatprep.mubr.bf16.mxu0 %v330_v45  ;;  %604 = vmatprep.mubr.bf16.mxu1 %v346_v46  ;;  %v321_v45 = vld [vmem:[%s1830_s19 + $0x1e0] sm:$0xff]  ;;  %v323_v46 = vld [vmem:[%s1830_s19 + $0x1f0] sm:$0xff]  ;;  %v339_v47 = vpack.c.bf16 %v291_v44, %v289_v43 }
  0x68   : > { %v355_v48 = vpack.c.bf16 %v323_v46, %v321_v45 }
  0x6e   : > { %541 = vmatmul.mubr.bf16.gmra.mxu0 %v329_v55  ;;  %605 = vmatmul.mubr.bf16.gmra.mxu1 %v345_v56 }
  0x6f   : > { %548 = vmatprep.mubr.bf16.mxu0 %v332_v57  ;;  %612 = vmatprep.mubr.bf16.mxu1 %v348_v58 }
  0x76   : > { %549 = vmatmul.mubr.bf16.gmra.mxu0 %v331_v3  ;;  %613 = vmatmul.mubr.bf16.gmra.mxu1 %v347_v4 }
  0x77   : > { %556 = vmatprep.mubr.bf16.mxu0 %v334_v5  ;;  %620 = vmatprep.mubr.bf16.mxu1 %v350_v6 }
  0x7e   : > { %557 = vmatmul.mubr.bf16.gmra.mxu0 %v333_v15  ;;  %621 = vmatmul.mubr.bf16.gmra.mxu1 %v349_v16 }
  0x7f   : > { %564 = vmatprep.mubr.bf16.mxu0 %v336_v17  ;;  %628 = vmatprep.mubr.bf16.mxu1 %v352_v18 }
  0x86   : > { %565 = vmatmul.mubr.bf16.gmra.mxu0 %v335_v27  ;;  %629 = vmatmul.mubr.bf16.gmra.mxu1 %v351_v28 }
  0x87   : > { %572 = vmatprep.mubr.bf16.mxu0 %v338_v29  ;;  %636 = vmatprep.mubr.bf16.mxu1 %v354_v30 }
  0x8e   : > { %573 = vmatmul.mubr.bf16.gmra.mxu0 %v337_v39  ;;  %637 = vmatmul.mubr.bf16.gmra.mxu1 %v353_v40 }
  0x8f   : > { %580 = vmatprep.mubr.bf16.mxu0 %v340_v41  ;;  %644 = vmatprep.mubr.bf16.mxu1 %v356_v42 }
  0x96   : > { %581 = vmatmul.mubr.bf16.gmra.mxu0 %v339_v47  ;;  %645 = vmatmul.mubr.bf16.gmra.mxu1 %v355_v48 }
 0x11e   : > { %v1284_v49 = vpop.f32.mrf.mxu0  ;;  %v1332_v50 = vpop.f32.mrf.mxu1 }
 0x120   : > { %v1285_v52 = vpop.f32.mrf.mxu0  ;;  %v1333_v53 = vpop.f32.mrf.mxu1 }
 0x121   : > { %v1286_v54 = vadd.f32 %v1285_v52, %v1284_v49  ;;  %v1334_v55 = vadd.f32 %v1333_v53, %v1332_v50 }
 0x122   : > { %v1287_v56 = vpop.f32.mrf.mxu0  ;;  %v1335_v57 = vpop.f32.mrf.mxu1 }
 0x123   : > { %v527_v58 = vadd.f32 %v1286_v54, %v1951_v51  ;;  %v591_v59 = vadd.f32 %v1334_v55, %v1951_v51 }
 0x124   : > { %v1288_v60 = vpop.f32.mrf.mxu0  ;;  %v1336_v61 = vpop.f32.mrf.mxu1 }
 0x125   : > { %1511 = vtanh.f32 %v527_v58  ;;  %v1289_v62 = vadd.f32 %v1288_v60, %v1287_v56  ;;  %v1337_v63 = vadd.f32 %v1336_v61, %v1335_v57 }
 0x126   : > { %v1290_v0 = vpop.f32.mrf.mxu0  ;;  %v1338_v1 = vpop.f32.mrf.mxu1  ;;  %1513 = vtanh.f32 %v591_v59 }
 0x127   : > { %v530_v2 = vadd.f32 %v1289_v62, %v1951_v51  ;;  %v594_v3 = vadd.f32 %v1337_v63, %v1951_v51 }
 0x128   : > { %v1291_v4 = vpop.f32.mrf.mxu0  ;;  %v1339_v5 = vpop.f32.mrf.mxu1 }
 0x129   : > { %v1292_v6 = vadd.f32 %v1291_v4, %v1290_v0  ;;  %v1340_v7 = vadd.f32 %v1339_v5, %v1338_v1  ;;  %1515 = vtanh.f32 %v594_v3 }
 0x12a   : > { %v1293_v8 = vpop.f32.mrf.mxu0  ;;  %v1341_v9 = vpop.f32.mrf.mxu1  ;;  %1517 = vtanh.f32 %v530_v2 }
 0x12b   : > { %v535_v10 = vadd.f32 %v1292_v6, %v1951_v51  ;;  %v599_v11 = vadd.f32 %v1340_v7, %v1951_v51 }
 0x12c   : > { %v1294_v12 = vpop.f32.mrf.mxu0  ;;  %v1342_v13 = vpop.f32.mrf.mxu1 }
 0x12d   : > { %1519 = vtanh.f32 %v535_v10  ;;  %v1295_v14 = vadd.f32 %v1294_v12, %v1293_v8  ;;  %v1343_v15 = vadd.f32 %v1342_v13, %v1341_v9 }
 0x12e   : > { %v1296_v16 = vpop.f32.mrf.mxu0  ;;  %v1344_v17 = vpop.f32.mrf.mxu1  ;;  %1521 = vtanh.f32 %v599_v11 }
 0x12f   : > { %v538_v18 = vadd.f32 %v1295_v14, %v1951_v51  ;;  %v602_v19 = vadd.f32 %v1343_v15, %v1951_v51 }
 0x130   : > { %v1297_v20 = vpop.f32.mrf.mxu0  ;;  %v1345_v21 = vpop.f32.mrf.mxu1 }
 0x131   : > { %1523 = vtanh.f32 %v538_v18  ;;  %v1298_v23 = vadd.f32 %v1297_v20, %v1296_v16  ;;  %v1346_v24 = vadd.f32 %v1345_v21, %v1344_v17 }
 0x132   : > { %v1512_v25 = vpop.eup %1511  ;;  %v1299_v26 = vpop.f32.mrf.mxu0  ;;  %1525 = vtanh.f32 %v602_v19 }
 0x133   : > { %v1347_v27 = vpop.f32.mrf.mxu1  ;;  %v543_v28 = vadd.f32 %v1298_v23, %v1951_v51  ;;  %v607_v29 = vadd.f32 %v1346_v24, %v1951_v51  ;;  %v692_v30 = vmul.f32 %v1512_v25, %v1964_v22  ;;  %v1514_v31 = vpop.eup %1513 }
 0x134   : > { %v1300_v32 = vpop.f32.mrf.mxu0  ;;  %v708_v40 = vmul.f32 %v1514_v31, %v1964_v22 }
 0x135   : > { %v1348_v33 = vpop.f32.mrf.mxu1  ;;  %1527 = vtanh.f32 %v543_v28  ;;  %v1301_v34 = vadd.f32 %v1300_v32, %v1299_v26  ;;  %724 = vadd.xlane.f32.xlu0 %v692_v30 }
 0x136   : > { %v1349_v35 = vadd.f32 %v1348_v33, %v1347_v27  ;;  %v1302_v36 = vpop.f32.mrf.mxu0  ;;  %v1516_v38 = vpop.eup %1515  ;;  %1529 = vtanh.f32 %v607_v29 }
 0x137   : > { %v1350_v37 = vpop.f32.mrf.mxu1  ;;  %v546_v39 = vadd.f32 %v1301_v34, %v1951_v51  ;;  %v1518_v41 = vpop.eup %1517  ;;  %v709_v45 = vmul.f32 %v1516_v38, %v1964_v22 }
 0x138   : > { %v610_v42 = vadd.f32 %v1349_v35, %v1951_v51  ;;  %v1303_v43 = vpop.f32.mrf.mxu0  ;;  %v693_v55 = vmul.f32 %v1518_v41, %v1964_v22 }
 0x139   : > { %v1351_v44 = vpop.f32.mrf.mxu1  ;;  %1531 = vtanh.f32 %v546_v39  ;;  %v1304_v46 = vadd.f32 %v1303_v43, %v1302_v36  ;;  %756 = vadd.xlane.f32.xlu0 %v708_v40  ;;  %758 = vadd.xlane.f32.xlu1 %v709_v45 }
 0x13a   : > { %v1352_v47 = vadd.f32 %v1351_v44, %v1350_v37  ;;  %v1520_v48 = vpop.eup %1519  ;;  %v1305_v49 = vpop.f32.mrf.mxu0  ;;  %1533 = vtanh.f32 %v610_v42 }
 0x13b   : > { %v1353_v50 = vpop.f32.mrf.mxu1  ;;  %v551_v52 = vadd.f32 %v1304_v46, %v1951_v51  ;;  %v694_v54 = vmul.f32 %v1520_v48, %v1964_v22  ;;  %v1522_v56 = vpop.eup %1521 }
 0x13c   : > { %v615_v53 = vadd.f32 %v1352_v47, %v1951_v51  ;;  %v1306_v57 = vpop.f32.mrf.mxu0  ;;  %v710_v2 = vmul.f32 %v1522_v56, %v1964_v22 }
 0x13d   : > { %v1354_v58 = vpop.f32.mrf.mxu1  ;;  %1535 = vtanh.f32 %v551_v52  ;;  %v1307_v59 = vadd.f32 %v1306_v57, %v1305_v49  ;;  %726 = vadd.xlane.f32.xlu0 %v693_v55  ;;  %728 = vadd.xlane.f32.xlu1 %v694_v54 }
 0x13e   : > { %v1355_v60 = vadd.f32 %v1354_v58, %v1353_v50  ;;  %v1524_v61 = vpop.eup %1523  ;;  %v1308_v62 = vpop.f32.mrf.mxu0  ;;  %1537 = vtanh.f32 %v615_v53 }
 0x13f   : > { %v1356_v63 = vpop.f32.mrf.mxu1  ;;  %v554_v0 = vadd.f32 %v1307_v59, %v1951_v51  ;;  %v695_v1 = vmul.f32 %v1524_v61, %v1964_v22  ;;  %v1526_v6 = vpop.eup %1525 }
 0x140   : > { %v618_v3 = vadd.f32 %v1355_v60, %v1951_v51  ;;  %v1309_v4 = vpop.f32.mrf.mxu0  ;;  %v711_v18 = vmul.f32 %v1526_v6, %v1964_v22 }
 0x141   : > { %v1357_v5 = vpop.f32.mrf.mxu1  ;;  %1539 = vtanh.f32 %v554_v0  ;;  %v1310_v7 = vadd.f32 %v1309_v4, %v1308_v62  ;;  %760 = vadd.xlane.f32.xlu0 %v710_v2  ;;  %730 = vadd.xlane.f32.xlu1 %v695_v1 }
 0x142   : > { %v1358_v8 = vadd.f32 %v1357_v5, %v1356_v63  ;;  %v1528_v9 = vpop.eup %1527  ;;  %v1311_v10 = vpop.f32.mrf.mxu0  ;;  %1541 = vtanh.f32 %v618_v3 }
 0x143   : > { %v1359_v11 = vpop.f32.mrf.mxu1  ;;  %v559_v12 = vadd.f32 %v1310_v7, %v1951_v51  ;;  %v696_v14 = vmul.f32 %v1528_v9, %v1964_v22  ;;  %v1530_v15 = vpop.eup %1529 }
 0x144   : > { %v623_v13 = vadd.f32 %v1358_v8, %v1951_v51  ;;  %v1312_v16 = vpop.f32.mrf.mxu0  ;;  %v712_v27 = vmul.f32 %v1530_v15, %v1964_v22 }
 0x145   : > { %v1360_v17 = vpop.f32.mrf.mxu1  ;;  %1543 = vtanh.f32 %v559_v12  ;;  %v1313_v19 = vadd.f32 %v1312_v16, %v1311_v10  ;;  %732 = vadd.xlane.f32.xlu0 %v696_v14  ;;  %762 = vadd.xlane.f32.xlu1 %v711_v18 }
 0x146   : > { %v1361_v20 = vadd.f32 %v1360_v17, %v1359_v11  ;;  %v1532_v21 = vpop.eup %1531  ;;  %v1314_v23 = vpop.f32.mrf.mxu0  ;;  %1545 = vtanh.f32 %v623_v13 }
 0x147   : > { %v1362_v24 = vpop.f32.mrf.mxu1  ;;  %v562_v25 = vadd.f32 %v1313_v19, %v1951_v51  ;;  %v697_v26 = vmul.f32 %v1532_v21, %v1964_v22  ;;  %v1534_v31 = vpop.eup %1533 }
 0x148   : > { %v626_v28 = vadd.f32 %v1361_v20, %v1951_v51  ;;  %v1315_v29 = vpop.f32.mrf.mxu0  ;;  %v713_v43 = vmul.f32 %v1534_v31, %v1964_v22 }
 0x149   : > { %v1363_v30 = vpop.f32.mrf.mxu1  ;;  %1547 = vtanh.f32 %v562_v25  ;;  %v1316_v32 = vadd.f32 %v1315_v29, %v1314_v23  ;;  %764 = vadd.xlane.f32.xlu0 %v712_v27  ;;  %734 = vadd.xlane.f32.xlu1 %v697_v26 }
 0x14a   : > { %v1364_v33 = vadd.f32 %v1363_v30, %v1362_v24  ;;  %v1536_v34 = vpop.eup %1535  ;;  %v1317_v35 = vpop.f32.mrf.mxu0  ;;  %1549 = vtanh.f32 %v626_v28 }
 0x14b   : > { %v1365_v36 = vpop.f32.mrf.mxu1  ;;  %v567_v37 = vadd.f32 %v1316_v32, %v1951_v51  ;;  %v698_v39 = vmul.f32 %v1536_v34, %v1964_v22  ;;  %v1538_v40 = vpop.eup %1537 }
 0x14c   : > { %v631_v38 = vadd.f32 %v1364_v33, %v1951_v51  ;;  %v1318_v41 = vpop.f32.mrf.mxu0  ;;  %v714_v52 = vmul.f32 %v1538_v40, %v1964_v22 }
 0x14d   : > { %v1366_v42 = vpop.f32.mrf.mxu1  ;;  %1551 = vtanh.f32 %v567_v37  ;;  %v1319_v44 = vadd.f32 %v1318_v41, %v1317_v35  ;;  %736 = vadd.xlane.f32.xlu0 %v698_v39  ;;  %766 = vadd.xlane.f32.xlu1 %v713_v43 }
 0x14e   : > { %v1367_v45 = vadd.f32 %v1366_v42, %v1365_v36  ;;  %v1540_v46 = vpop.eup %1539  ;;  %1553 = vtanh.f32 %v631_v38  ;;  %v1320_v47 = vpop.f32.mrf.mxu0 }
 0x14f   : > { %v1368_v48 = vpop.f32.mrf.mxu1  ;;  %v570_v49 = vadd.f32 %v1319_v44, %v1951_v51  ;;  %v699_v50 = vmul.f32 %v1540_v46, %v1964_v22  ;;  %v1542_v56 = vpop.eup %1541 }
 0x150   : > { %v634_v53 = vadd.f32 %v1367_v45, %v1951_v51  ;;  %v1321_v54 = vpop.f32.mrf.mxu0  ;;  %v715_v4 = vmul.f32 %v1542_v56, %v1964_v22 }
 0x151   : > { %v1369_v55 = vpop.f32.mrf.mxu1  ;;  %1555 = vtanh.f32 %v570_v49  ;;  %v1322_v57 = vadd.f32 %v1321_v54, %v1320_v47  ;;  %768 = vadd.xlane.f32.xlu0 %v714_v52  ;;  %738 = vadd.xlane.f32.xlu1 %v699_v50 }
 0x152   : > { %v1370_v58 = vadd.f32 %v1369_v55, %v1368_v48  ;;  %v1544_v59 = vpop.eup %1543  ;;  %v1323_v60 = vpop.f32.mrf.mxu0  ;;  %1557 = vtanh.f32 %v634_v53  ;;  %v2023_v55 = vld [vmem:[#allocation2] ss:$0 sm:$0xff] }
 0x153   : > { %v1371_v61 = vpop.f32.mrf.mxu1  ;;  %v575_v62 = vadd.f32 %v1322_v57, %v1951_v51  ;;  %v700_v0 = vmul.f32 %v1544_v59, %v1964_v22  ;;  %v1546_v1 = vpop.eup %1545 }
 0x154   : > { %v639_v63 = vadd.f32 %v1370_v58, %v1951_v51  ;;  %v1324_v2 = vpop.f32.mrf.mxu0  ;;  %v716_v12 = vmul.f32 %v1546_v1, %v1964_v22 }
 0x155   : > { %v1372_v3 = vpop.f32.mrf.mxu1  ;;  %1559 = vtanh.f32 %v575_v62  ;;  %v1325_v5 = vadd.f32 %v1324_v2, %v1323_v60  ;;  %740 = vadd.xlane.f32.xlu0 %v700_v0  ;;  %770 = vadd.xlane.f32.xlu1 %v715_v4 }
 0x156   : > { %v1373_v6 = vadd.f32 %v1372_v3, %v1371_v61  ;;  %v1548_v7 = vpop.eup %1547  ;;  %v1326_v8 = vpop.f32.mrf.mxu0  ;;  %1561 = vtanh.f32 %v639_v63 }
 0x157   : > { %v1374_v9 = vpop.f32.mrf.mxu1  ;;  %v578_v10 = vadd.f32 %v1325_v5, %v1951_v51  ;;  %v701_v11 = vmul.f32 %v1548_v7, %v1964_v22  ;;  %v1550_v16 = vpop.eup %1549 }
 0x158   : > { %v642_v13 = vadd.f32 %v1373_v6, %v1951_v51  ;;  %v1327_v14 = vpop.f32.mrf.mxu0  ;;  %v717_v29 = vmul.f32 %v1550_v16, %v1964_v22 }
 0x159   : > { %v1375_v15 = vpop.f32.mrf.mxu1  ;;  %1563 = vtanh.f32 %v578_v10  ;;  %v1328_v17 = vadd.f32 %v1327_v14, %v1326_v8  ;;  %772 = vadd.xlane.f32.xlu0 %v716_v12  ;;  %742 = vadd.xlane.f32.xlu1 %v701_v11 }
 0x15a   : > { %v1376_v18 = vadd.f32 %v1375_v15, %v1374_v9  ;;  %v1552_v19 = vpop.eup %1551  ;;  %v1329_v20 = vpop.f32.mrf.mxu0  ;;  %1565 = vtanh.f32 %v642_v13 }
 0x15b   : > { %v1377_v21 = vpop.f32.mrf.mxu1  ;;  %v1554_v23 = vpop.eup %1553  ;;  %v583_v24 = vadd.f32 %v1328_v17, %v1951_v51  ;;  %v702_v26 = vmul.f32 %v1552_v19, %v1964_v22 }
 0x15c   : > { %v647_v25 = vadd.f32 %v1376_v18, %v1951_v51  ;;  %v1330_v27 = vpop.f32.mrf.mxu0  ;;  %v718_v33 = vmul.f32 %v1554_v23, %v1964_v22 }
 0x15d   : > { %v1378_v28 = vpop.f32.mrf.mxu1  ;;  %1567 = vtanh.f32 %v583_v24  ;;  %v1331_v30 = vadd.f32 %v1330_v27, %v1329_v20  ;;  %744 = vadd.xlane.f32.xlu0 %v702_v26  ;;  %774 = vadd.xlane.f32.xlu1 %v717_v29 }
 0x15e   : > { %v1379_v31 = vadd.f32 %v1378_v28, %v1377_v21  ;;  %v1556_v32 = vpop.eup %1555  ;;  %1569 = vtanh.f32 %v647_v25 }
 0x15f   : > { %v586_v34 = vadd.f32 %v1331_v30, %v1951_v51  ;;  %v703_v36 = vmul.f32 %v1556_v32, %v1964_v22  ;;  %v1558_v37 = vpop.eup %1557 }
 0x160   : > { %v650_v35 = vadd.f32 %v1379_v31, %v1951_v51  ;;  %v719_v41 = vmul.f32 %v1558_v37, %v1964_v22 }
 0x161   : > { %1571 = vtanh.f32 %v586_v34  ;;  %776 = vadd.xlane.f32.xlu0 %v718_v33  ;;  %746 = vadd.xlane.f32.xlu1 %v703_v36 }
 0x162   : > { %v1560_v38 = vpop.eup %1559  ;;  %1573 = vtanh.f32 %v650_v35 }
 0x163   : > { %v704_v39 = vmul.f32 %v1560_v38, %v1964_v22  ;;  %v1562_v40 = vpop.eup %1561 }
 0x164   : > { %v720_v51 = vmul.f32 %v1562_v40, %v1964_v22 }
 0x165   : > { %748 = vadd.xlane.f32.xlu0 %v704_v39  ;;  %778 = vadd.xlane.f32.xlu1 %v719_v41 }
 0x166   : > { %v1564_v42 = vpop.eup %1563 }
 0x167   : > { %v705_v43 = vmul.f32 %v1564_v42, %v1964_v22  ;;  %v1566_v44 = vpop.eup %1565 }
 0x168   : > { %v721_v48 = vmul.f32 %v1566_v44, %v1964_v22 }
 0x169   : > { %780 = vadd.xlane.f32.xlu0 %v720_v51  ;;  %750 = vadd.xlane.f32.xlu1 %v705_v43 }
 0x16a   : > { %v1568_v45 = vpop.eup %1567 }
 0x16b   : > { %v706_v46 = vmul.f32 %v1568_v45, %v1964_v22  ;;  %v1570_v47 = vpop.eup %1569 }
 0x16c   : > { %v722_v53 = vmul.f32 %v1570_v47, %v1964_v22 }
 0x16d   : > { %752 = vadd.xlane.f32.xlu0 %v706_v46  ;;  %782 = vadd.xlane.f32.xlu1 %v721_v48 }
 0x16e   : > { %v1572_v49 = vpop.eup %1571 }
 0x16f   : > { %v1574_v50 = vpop.eup %1573  ;;  %v707_v52 = vmul.f32 %v1572_v49, %v1964_v22 }
 0x170   : > { %v723_v54 = vmul.f32 %v1574_v50, %v1964_v22 }
 0x171   : > { %784 = vadd.xlane.f32.xlu0 %v722_v53  ;;  %754 = vadd.xlane.f32.xlu1 %v707_v52 }
 0x175   : > { %786 = vadd.xlane.f32.xlu1 %v723_v54 }
 0x1be   : > { %v725_v56 = vpop.xlane.xlu0 %724 }
 0x1bf   : > { %v795_v57 = vadd.f32 %v2023_v55, %v725_v56 }
 0x1c1   : > { %828 = vst.msk [vmem:[%s2026_s9] sm:$0xff] %vm827_vm0, %v795_v57 }
 0x1c2   : > { %v757_v22 = vpop.xlane.xlu0 %756  ;;  %v759_v58 = vpop.xlane.xlu1 %758 }
 0x1c3   : > { %v811_v59 = vadd.f32 %v2023_v55, %v757_v22  ;;  %v812_v60 = vadd.f32 %v2023_v55, %v759_v58 }
 0x1c5   : > { %844 = vst.msk [vmem:[%s2026_s9 + $0x80] sm:$0xff] %vm827_vm0, %v811_v59  ;;  %845 = vst.msk [vmem:[%s2026_s9 + $0x88] sm:$0xff] %vm827_vm0, %v812_v60 }
 0x1c6   : > { %v727_v61 = vpop.xlane.xlu0 %726  ;;  %v729_v62 = vpop.xlane.xlu1 %728 }
 0x1c7   : > { %v796_v63 = vadd.f32 %v2023_v55, %v727_v61  ;;  %v797_v0 = vadd.f32 %v2023_v55, %v729_v62 }
 0x1c9   : > { %829 = vst.msk [vmem:[%s2026_s9 + $0x8] sm:$0xff] %vm827_vm0, %v796_v63  ;;  %830 = vst.msk [vmem:[%s2026_s9 + $0x10] sm:$0xff] %vm827_vm0, %v797_v0 }
 0x1ca   : > { %v761_v1 = vpop.xlane.xlu0 %760  ;;  %v731_v2 = vpop.xlane.xlu1 %730 }
 0x1cb   : > { %v813_v3 = vadd.f32 %v2023_v55, %v761_v1  ;;  %v798_v4 = vadd.f32 %v2023_v55, %v731_v2 }
 0x1cd   : > { %846 = vst.msk [vmem:[%s2026_s9 + $0x90] sm:$0xff] %vm827_vm0, %v813_v3  ;;  %831 = vst.msk [vmem:[%s2026_s9 + $0x18] sm:$0xff] %vm827_vm0, %v798_v4 }
 0x1ce   : > { %v733_v5 = vpop.xlane.xlu0 %732  ;;  %v763_v6 = vpop.xlane.xlu1 %762 }
 0x1cf   : > { %v799_v7 = vadd.f32 %v2023_v55, %v733_v5  ;;  %v814_v8 = vadd.f32 %v2023_v55, %v763_v6 }
 0x1d1   : > { %832 = vst.msk [vmem:[%s2026_s9 + $0x20] sm:$0xff] %vm827_vm0, %v799_v7  ;;  %847 = vst.msk [vmem:[%s2026_s9 + $0x98] sm:$0xff] %vm827_vm0, %v814_v8 }
 0x1d2   : > { %v765_v9 = vpop.xlane.xlu0 %764  ;;  %v735_v10 = vpop.xlane.xlu1 %734 }
 0x1d3   : > { %v815_v11 = vadd.f32 %v2023_v55, %v765_v9  ;;  %v800_v12 = vadd.f32 %v2023_v55, %v735_v10 }
 0x1d5   : > { %848 = vst.msk [vmem:[%s2026_s9 + $0xa0] sm:$0xff] %vm827_vm0, %v815_v11  ;;  %833 = vst.msk [vmem:[%s2026_s9 + $0x28] sm:$0xff] %vm827_vm0, %v800_v12 }
 0x1d6   : > { %v737_v13 = vpop.xlane.xlu0 %736  ;;  %v767_v14 = vpop.xlane.xlu1 %766 }
 0x1d7   : > { %v801_v15 = vadd.f32 %v2023_v55, %v737_v13  ;;  %v816_v16 = vadd.f32 %v2023_v55, %v767_v14 }
 0x1d9   : > { %834 = vst.msk [vmem:[%s2026_s9 + $0x30] sm:$0xff] %vm827_vm0, %v801_v15  ;;  %849 = vst.msk [vmem:[%s2026_s9 + $0xa8] sm:$0xff] %vm827_vm0, %v816_v16 }
 0x1da   : > { %v769_v17 = vpop.xlane.xlu0 %768  ;;  %v739_v18 = vpop.xlane.xlu1 %738 }
 0x1db   : > { %v817_v19 = vadd.f32 %v2023_v55, %v769_v17  ;;  %v802_v20 = vadd.f32 %v2023_v55, %v739_v18 }
 0x1dd   : > { %850 = vst.msk [vmem:[%s2026_s9 + $0xb0] sm:$0xff] %vm827_vm0, %v817_v19  ;;  %835 = vst.msk [vmem:[%s2026_s9 + $0x38] sm:$0xff] %vm827_vm0, %v802_v20 }
 0x1de   : > { %v741_v21 = vpop.xlane.xlu0 %740  ;;  %v771_v23 = vpop.xlane.xlu1 %770 }
 0x1df   : > { %v803_v24 = vadd.f32 %v2023_v55, %v741_v21  ;;  %v818_v25 = vadd.f32 %v2023_v55, %v771_v23 }
 0x1e1   : > { %836 = vst.msk [vmem:[%s2026_s9 + $0x40] sm:$0xff] %vm827_vm0, %v803_v24  ;;  %851 = vst.msk [vmem:[%s2026_s9 + $0xb8] sm:$0xff] %vm827_vm0, %v818_v25 }
 0x1e2   : > { %v773_v26 = vpop.xlane.xlu0 %772  ;;  %v743_v27 = vpop.xlane.xlu1 %742 }
 0x1e3   : > { %v819_v28 = vadd.f32 %v2023_v55, %v773_v26  ;;  %v804_v29 = vadd.f32 %v2023_v55, %v743_v27 }
 0x1e5   : > { %852 = vst.msk [vmem:[%s2026_s9 + $0xc0] sm:$0xff] %vm827_vm0, %v819_v28  ;;  %837 = vst.msk [vmem:[%s2026_s9 + $0x48] sm:$0xff] %vm827_vm0, %v804_v29 }
 0x1e6   : > { %v745_v30 = vpop.xlane.xlu0 %744  ;;  %v775_v31 = vpop.xlane.xlu1 %774 }
 0x1e7   : > { %v805_v32 = vadd.f32 %v2023_v55, %v745_v30  ;;  %v820_v33 = vadd.f32 %v2023_v55, %v775_v31 }
 0x1e9   : > { %838 = vst.msk [vmem:[%s2026_s9 + $0x50] sm:$0xff] %vm827_vm0, %v805_v32  ;;  %853 = vst.msk [vmem:[%s2026_s9 + $0xc8] sm:$0xff] %vm827_vm0, %v820_v33 }
 0x1ea   : > { %v777_v34 = vpop.xlane.xlu0 %776  ;;  %v747_v35 = vpop.xlane.xlu1 %746 }
 0x1eb   : > { %v821_v36 = vadd.f32 %v2023_v55, %v777_v34  ;;  %v806_v37 = vadd.f32 %v2023_v55, %v747_v35 }
 0x1ed   : > { %854 = vst.msk [vmem:[%s2026_s9 + $0xd0] sm:$0xff] %vm827_vm0, %v821_v36  ;;  %839 = vst.msk [vmem:[%s2026_s9 + $0x58] sm:$0xff] %vm827_vm0, %v806_v37 }
 0x1ee   : > { %v749_v38 = vpop.xlane.xlu0 %748  ;;  %v779_v39 = vpop.xlane.xlu1 %778 }
 0x1ef   : > { %v807_v40 = vadd.f32 %v2023_v55, %v749_v38  ;;  %v822_v41 = vadd.f32 %v2023_v55, %v779_v39 }
 0x1f1   : > { %840 = vst.msk [vmem:[%s2026_s9 + $0x60] sm:$0xff] %vm827_vm0, %v807_v40  ;;  %855 = vst.msk [vmem:[%s2026_s9 + $0xd8] sm:$0xff] %vm827_vm0, %v822_v41 }
 0x1f2   : > { %v781_v42 = vpop.xlane.xlu0 %780  ;;  %v751_v43 = vpop.xlane.xlu1 %750 }
 0x1f3   : > { %v823_v51 = vadd.f32 %v2023_v55, %v781_v42  ;;  %v808_v44 = vadd.f32 %v2023_v55, %v751_v43 }
 0x1f5   : > { %856 = vst.msk [vmem:[%s2026_s9 + $0xe0] sm:$0xff] %vm827_vm0, %v823_v51  ;;  %841 = vst.msk [vmem:[%s2026_s9 + $0x68] sm:$0xff] %vm827_vm0, %v808_v44 }
 0x1f6   : > { %v753_v45 = vpop.xlane.xlu0 %752  ;;  %v783_v46 = vpop.xlane.xlu1 %782 }
 0x1f7   : > { %v809_v47 = vadd.f32 %v2023_v55, %v753_v45  ;;  %v824_v48 = vadd.f32 %v2023_v55, %v783_v46 }
 0x1f9   : > { %842 = vst.msk [vmem:[%s2026_s9 + $0x70] sm:$0xff] %vm827_vm0, %v809_v47  ;;  %857 = vst.msk [vmem:[%s2026_s9 + $0xe8] sm:$0xff] %vm827_vm0, %v824_v48 }
 0x1fa   : > { %v785_v49 = vpop.xlane.xlu0 %784  ;;  %v755_v50 = vpop.xlane.xlu1 %754 }
 0x1fb   : > { %v825_v52 = vadd.f32 %v2023_v55, %v785_v49  ;;  %v810_v53 = vadd.f32 %v2023_v55, %v755_v50 }
 0x1fd   : > { %858 = vst.msk [vmem:[%s2026_s9 + $0xf0] sm:$0xff] %vm827_vm0, %v825_v52  ;;  %843 = vst.msk [vmem:[%s2026_s9 + $0x78] sm:$0xff] %vm827_vm0, %v810_v53  ;;  %866 = sbr.rel (!%p1777_p8) target bundleno = 562 (0x232), region = 48 }
 0x1fe   : > { %v787_v54 = vpop.xlane.xlu1 %786 }
 0x1ff   : > { %v826_v56 = vadd.f32 %v2023_v55, %v787_v54 }
 0x201   : > { %859 = vst.msk [vmem:[%s2026_s9 + $0xf8] sm:$0xff] %vm827_vm0, %v826_v56 }
 0x202   : > { %s2285_s23 = smov (!%p869_p7, %s868_s23), 32 }
 0x203   : > { %s1247_s25 = sshll.u32 %s2285_s23, 7 }
 0x204   : > { %p1250_p11 = scmp.eq.s32.totalorder %s1247_s25, 0 }
 0x205   : > { %s2136_s29 = sshrl.u32 (!%p1250_p11), %s2285_s23, 5 }
 0x206   : > { %877 = sbr.rel (%p1250_p11) target bundleno = 562 (0x232), region = 52  ;;  %p1251_p8 = scmp.le.s32.totalorder (!%p1250_p11), %s2136_s29, 0 }
 0x20b   : > { %1164 = sbr.rel (%p1251_p8) target bundleno = 545 (0x221), region = 134  ;;  %s2273_s4 = smov (!%p1251_p8), %s2130_s20 }
 0x20c   : > { %s2274_s26 = smov (!%p1251_p8), %s2026_s9  ;;  %s2145_s28 = smov (!%p1251_p8), 0  }
 0x20d   : > { %s2147_s30 = smov (!%p1251_p8), 0  }
 0x210 LB: >> { %v1002_v55 = vld [vmem:[%s1675_s26] sm:$0xff]  ;;  %v1004_v57 = vld [vmem:[%s1675_s26 + $0x8] sm:$0xff]  ;;  %v1006_v22 = vld [vmem:[%s1675_s26 + $0x10] sm:$0xff]  ;;  %s1066_s6 = sadd.s32 1, %s1679_s28  ;;  %s996_s30 = sadd.s32 1, %s1683_s30   ;;  %s1683_s30 = sphi %s2147_s30, %s996_s30   ;;  %s1679_s28 = sphi %s2145_s28, %s2277_s28   ;;  %s1675_s26 = sphi %s2274_s26, %s2276_s26   ;;  %s1671_s4 = sphi %s2273_s4, %s2275_s4  }
 0x211   : >> { %1003 = vst [vmem:[%s1671_s4] sm:$0xff] %v1002_v55  ;;  %1005 = vst [vmem:[%s1671_s4 + $0x8] sm:$0xff] %v1004_v57  ;;  %v1008_v58 = vld [vmem:[%s1675_s26 + $0x18] sm:$0xff]  ;;  %v1010_v59 = vld [vmem:[%s1675_s26 + $0x20] sm:$0xff]  ;;  %p1067_p4 = scmp.ge.s32.totalorder %s1066_s6, %s2136_s29  ;;  %p995_p5 = scmp.ge.s32.totalorder %s996_s30, %s2136_s29 }
 0x212   : >> { %1007 = vst [vmem:[%s1671_s4 + $0x10] sm:$0xff] %v1006_v22  ;;  %v1012_v60 = vld [vmem:[%s1675_s26 + $0x28] sm:$0xff]  ;;  %1009 = vst [vmem:[%s1671_s4 + $0x18] sm:$0xff] %v1008_v58  ;;  %v1014_v61 = vld [vmem:[%s1675_s26 + $0x30] sm:$0xff] }
 0x213   : >> { %1011 = vst [vmem:[%s1671_s4 + $0x20] sm:$0xff] %v1010_v59  ;;  %1013 = vst [vmem:[%s1671_s4 + $0x28] sm:$0xff] %v1012_v60  ;;  %v1016_v62 = vld [vmem:[%s1675_s26 + $0x38] sm:$0xff]  ;;  %v1018_v63 = vld [vmem:[%s1675_s26 + $0x40] sm:$0xff]  ;;  %s2287_s6 = smov (%p1067_p4, %s1066_s6), 0 }
 0x214   : >> { %1015 = vst [vmem:[%s1671_s4 + $0x30] sm:$0xff] %v1014_v61  ;;  %1017 = vst [vmem:[%s1671_s4 + $0x38] sm:$0xff] %v1016_v62  ;;  %v1020_v0 = vld [vmem:[%s1675_s26 + $0x48] sm:$0xff]  ;;  %v1022_v1 = vld [vmem:[%s1675_s26 + $0x50] sm:$0xff]  ;;  %s1252_s7 = sshll.u32 %s2287_s6, 8  ;;  %s2277_s28 = smov %s2287_s6 }
 0x215   : >> { %1019 = vst [vmem:[%s1671_s4 + $0x40] sm:$0xff] %v1018_v63  ;;  %v1024_v2 = vld [vmem:[%s1675_s26 + $0x58] sm:$0xff]  ;;  %1021 = vst [vmem:[%s1671_s4 + $0x48] sm:$0xff] %v1020_v0  ;;  %v1026_v3 = vld [vmem:[%s1675_s26 + $0x60] sm:$0xff]  ;;  %s2203_s8 = scalar_lea.vmem %s2026_s9, %s1252_s7 [#allocation5]   ;;  %s1072_s10 = scalar_lea.vmem %s2130_s20, %s1252_s7  }
 0x216   : >> { %1023 = vst [vmem:[%s1671_s4 + $0x50] sm:$0xff] %v1022_v1  ;;  %1025 = vst [vmem:[%s1671_s4 + $0x58] sm:$0xff] %v1024_v2  ;;  %v1028_v4 = vld [vmem:[%s1675_s26 + $0x68] sm:$0xff]  ;;  %v1030_v5 = vld [vmem:[%s1675_s26 + $0x70] sm:$0xff] }
 0x217   : >> { %1027 = vst [vmem:[%s1671_s4 + $0x60] sm:$0xff] %v1026_v3  ;;  %1029 = vst [vmem:[%s1671_s4 + $0x68] sm:$0xff] %v1028_v4  ;;  %v1032_v6 = vld [vmem:[%s1675_s26 + $0x78] sm:$0xff]  ;;  %v1034_v7 = vld [vmem:[%s1675_s26 + $0x80] sm:$0xff] }
 0x218   : >> { %1031 = vst [vmem:[%s1671_s4 + $0x70] sm:$0xff] %v1030_v5  ;;  %v1036_v8 = vld [vmem:[%s1675_s26 + $0x88] sm:$0xff]  ;;  %1033 = vst [vmem:[%s1671_s4 + $0x78] sm:$0xff] %v1032_v6  ;;  %v1038_v9 = vld [vmem:[%s1675_s26 + $0x90] sm:$0xff] }
 0x219   : >> { %1035 = vst [vmem:[%s1671_s4 + $0x80] sm:$0xff] %v1034_v7  ;;  %1037 = vst [vmem:[%s1671_s4 + $0x88] sm:$0xff] %v1036_v8  ;;  %v1040_v10 = vld [vmem:[%s1675_s26 + $0x98] sm:$0xff]  ;;  %v1042_v11 = vld [vmem:[%s1675_s26 + $0xa0] sm:$0xff] }
 0x21a   : >> { %1039 = vst [vmem:[%s1671_s4 + $0x90] sm:$0xff] %v1038_v9  ;;  %1041 = vst [vmem:[%s1671_s4 + $0x98] sm:$0xff] %v1040_v10  ;;  %v1044_v12 = vld [vmem:[%s1675_s26 + $0xa8] sm:$0xff]  ;;  %v1046_v13 = vld [vmem:[%s1675_s26 + $0xb0] sm:$0xff] }
 0x21b   : >> { %1043 = vst [vmem:[%s1671_s4 + $0xa0] sm:$0xff] %v1042_v11  ;;  %v1048_v14 = vld [vmem:[%s1675_s26 + $0xb8] sm:$0xff]  ;;  %1045 = vst [vmem:[%s1671_s4 + $0xa8] sm:$0xff] %v1044_v12  ;;  %v1050_v15 = vld [vmem:[%s1675_s26 + $0xc0] sm:$0xff] }
 0x21c   : >> { %1047 = vst [vmem:[%s1671_s4 + $0xb0] sm:$0xff] %v1046_v13  ;;  %1049 = vst [vmem:[%s1671_s4 + $0xb8] sm:$0xff] %v1048_v14  ;;  %v1052_v16 = vld [vmem:[%s1675_s26 + $0xc8] sm:$0xff]  ;;  %v1054_v17 = vld [vmem:[%s1675_s26 + $0xd0] sm:$0xff]  ;;  %998 = sbr.rel (!%p995_p5) target bundleno = 528 (0x210), region = 140 }
 0x21d   : >> { %1051 = vst [vmem:[%s1671_s4 + $0xc0] sm:$0xff] %v1050_v15  ;;  %1053 = vst [vmem:[%s1671_s4 + $0xc8] sm:$0xff] %v1052_v16  ;;  %v1056_v18 = vld [vmem:[%s1675_s26 + $0xd8] sm:$0xff]  ;;  %v1058_v19 = vld [vmem:[%s1675_s26 + $0xe0] sm:$0xff] }
 0x21e   : >> { %1055 = vst [vmem:[%s1671_s4 + $0xd0] sm:$0xff] %v1054_v17  ;;  %v1060_v20 = vld [vmem:[%s1675_s26 + $0xe8] sm:$0xff]  ;;  %1057 = vst [vmem:[%s1671_s4 + $0xd8] sm:$0xff] %v1056_v18  ;;  %v1062_v21 = vld [vmem:[%s1675_s26 + $0xf0] sm:$0xff] }
 0x21f   : >> { %1059 = vst [vmem:[%s1671_s4 + $0xe0] sm:$0xff] %v1058_v19  ;;  %1061 = vst [vmem:[%s1671_s4 + $0xe8] sm:$0xff] %v1060_v20  ;;  %v1064_v23 = vld [vmem:[%s1675_s26 + $0xf8] sm:$0xff]  ;;  %s2276_s26 = smov %s2203_s8 }
 0x220   : >> { %1063 = vst [vmem:[%s1671_s4 + $0xf0] sm:$0xff] %v1062_v21  ;;  %1065 = vst [vmem:[%s1671_s4 + $0xf8] sm:$0xff] %v1064_v23  ;;  %s2275_s4 = smov %s1072_s10 }
 0x221 PF: > { %s2244_s12 = sand.u32 31, %s2285_s23   ;;  %s1266_s13 = sshll.u32 %s2136_s29, 8 }
 0x222   : > { %s1077_s19 = scalar_lea.vmem %s2026_s9, %s1266_s13 [#allocation5]   ;;  %s1079_s15 = scalar_lea.vmem %s2130_s20, %s1266_s13  }
 0x223   : > { %p1257_p6 = scmp.le.s32.totalorder %s2244_s12, 0 }
 0x224   : > { %s1685_s18 = smov (!%p1257_p6), %s1079_s15   ;;  %s1689_s14 = smov (!%p1257_p6), %s1077_s19  }
 0x225   : > { %1178 = sbr.rel (%p1257_p6) target bundleno = 562 (0x232), region = 145  ;;  %s1693_s11 = smov (!%p1257_p6), 0  }
 0x226   : > { %s1697_s16 = smov (!%p1257_p6), 0  }
 0x22a LB: >> { %v1089_v24 = vld [vmem:[%s1691_s14] sm:$0xff]  ;;  %s1091_s23 = sadd.s32 1, %s1695_s11  ;;  %s1083_s16 = sadd.s32 1, %s1699_s16   ;;  %s1699_s16 = sphi %s1697_s16, %s1083_s16   ;;  %s1695_s11 = sphi %s1693_s11, %s1694_s11   ;;  %s1691_s14 = sphi %s1689_s14, %s1096_s14   ;;  %s1687_s18 = sphi %s1685_s18, %s1097_s18  }
 0x22b   : >> { %1090 = vst [vmem:[%s1687_s18] sm:$0xff] %v1089_v24  ;;  %p1092_p9 = scmp.ge.s32.totalorder %s1091_s23, %s2244_s12  ;;  %p1082_p10 = scmp.ge.s32.totalorder %s1083_s16, %s2244_s12 }
 0x22d   : >> { %s2289_s23 = smov (%p1092_p9, %s1091_s23), 0  ;;  %1085 = sbr.rel (!%p1082_p10) target bundleno = 554 (0x22a), region = 151 }
 0x22e   : >> { %s1258_s9 = sshll.u32 %s2289_s23, 3  ;;  %s1694_s11 = smov %s2289_s23  }
 0x22f   : >> { %s1096_s14 = scalar_lea.vmem %s1077_s19, %s1258_s9 [#allocation5]   ;;  %s1097_s18 = scalar_lea.vmem %s1079_s15, %s1258_s9  }
 0x232 PF: > { %p17_p12 = scmp.ge.s32.totalorder %s1759_s24, 5   ;;  %s2278_s20 = smov %s1659_s21 }
 0x233   : > { %s2279_s21 = smov %s1663_s22  ;;  %s2280_s22 = smov %s1769_s27 }
 0x234   : > { %s2281_s23 = smov %s1759_s24  ;;  %19 = sbr.rel (!%p17_p12) target bundleno = 6 (0x6), region = 162 }
 0x239   :  { %1113 = vsyncpa [#allocation4], 1 }
 0x23a   :  { %1115 = vsyncpa [#allocation4 + $0x1], 1 }

</bundles_post_ra>
